<compile_context>
chip_gen: v5e
topology: v5e:2x2
jax: 0.10.0
libtpu: 0.0.40
codegen_flags: <defaults>
</compile_context>

<pallas_src>
import functools

import jax
import jax.numpy as jnp
from jax.experimental import pallas as pl
from jax.experimental.pallas import tpu as pltpu

_MASK_VAL = -1e30  # finite "minus infinity" for masked / padded vocab columns


# --------------------------------------------------------------------------- #
# helpers
# --------------------------------------------------------------------------- #
def _round_up(x: int, m: int) -> int:
    return ((x + m - 1) // m) * m


def _cdiv(a: int, b: int) -> int:
    return -(-a // b)


def _vmem_budget_bytes(default=48 * 1024 * 1024) -> int:
    """VMEM budget: <= 3/4 of physical and >= 20 MiB headroom for compiler scratch
    (the headroom matters most on v7x, which only has 64 MiB per TensorCore)."""
    try:
        info = pltpu.get_tpu_info()
        cap = getattr(info, "vmem_capacity_bytes", None)
        if cap:
            cap = int(cap)
            return max(24 * 1024 * 1024,
                       min(3 * cap // 4, cap - 20 * 1024 * 1024))
    except Exception:
        pass
    return default


def _fit_tiles(tn: int, tv: int, H: int, x_item: int, w_item: int,
               budget: int) -> tuple[int, int]:
    """Shrink (vocab tile first, then token tile) until the working set fits."""
    def need(tn_, tv_):
        return (2 * tn_ * H * x_item          # x tile, double buffered
                + 2 * tv_ * H * w_item        # weight tile, double buffered
                + 2 * tv_ * 4                 # bias tile
                + 2 * tn_ * tv_ * 4           # logits tile / spill headroom
                + 3 * tn_ * 128 * 4           # lane-wide scratch accumulators
                + 16 * tn_ * 4)               # labels/olp/adv/mask/out buffers

    while need(tn, tv) > budget and tv > 256:
        tv = max(256, ((tv // 2) // 128) * 128)
    while need(tn, tv) > budget and tn > 256:
        tn = max(256, ((tn // 2) // 16) * 16)
    while need(tn, tv) > budget and tv > 128:
        tv = 128
    while need(tn, tv) > budget and tn > 16:
        tn = max(16, ((tn // 2) // 16) * 16)
    return tn, tv


# --------------------------------------------------------------------------- #
# fused kernel: linear + log_probs_from_logits + PPO clipped policy loss
# --------------------------------------------------------------------------- #
def _fused_ppo_body(x_ref, w_ref, b_ref, lbl_ref, olp_ref, adv_ref, mask_ref,
                    loss_ref, m_sc, s_sc, pick_sc, *,
                    tv: int, v_total: int, clip_eps: float,
                    needs_vmask: bool, precision=None):
    v = pl.program_id(1)

    @pl.when(v == 0)
    def _():
        m_sc[...] = jnp.full(m_sc.shape, -jnp.inf, jnp.float32)
        s_sc[...] = jnp.zeros(s_sc.shape, jnp.float32)
        pick_sc[...] = jnp.zeros(pick_sc.shape, jnp.float32)

    # logits tile: (tn, tv) = x(tn, H) . W_tile(tv, H)^T + bias  -- native-dtype
    # MXU operands, f32 accumulate.  W is consumed in its natural (V, H) layout.
    logits = jax.lax.dot_general(
        x_ref[...], w_ref[...],
        dimension_numbers=(((1,), (1,)), ((), ())),
        preferred_element_type=jnp.float32,
        precision=precision)
    logits = logits + b_ref[...].astype(jnp.float32)

    lbl = lbl_ref[...]                                           # (tn, 1) int32
    lane = jax.lax.broadcasted_iota(jnp.int32, (logits.shape[0], 128), 1)
    n_chunks = tv // 128
    base = v * tv

    # ---- lane-blocked online logsumexp (no cross-lane reduce in this loop) ----
    m_prev = m_sc[...]                                           # (tn, 128)
    tile_max = None
    chunk_cols = []
    for c in range(n_chunks):
        chunk = logits[:, c * 128:(c + 1) * 128]                 # (tn, 128)
        col = lane + (base + c * 128)
        if needs_vmask:  # only the ragged last vocab tile has columns >= V
            chunk = jnp.where(col < v_total, chunk, _MASK_VAL)
        chunk_cols.append((chunk, col))
        tile_max = chunk if tile_max is None else jnp.maximum(tile_max, chunk)

    m_new = jnp.maximum(m_prev, tile_max)
    tile_sum = jnp.zeros(m_new.shape, jnp.float32)
    pick_acc = pick_sc[...]
    for chunk, col in chunk_cols:
        tile_sum = tile_sum + jnp.exp(chunk - m_new)
        pick_acc = pick_acc + jnp.where(col == lbl, chunk, 0.0)  # label gather

    s_sc[...] = s_sc[...] * jnp.exp(m_prev - m_new) + tile_sum
    m_sc[...] = m_new
    pick_sc[...] = pick_acc

    # ---- epilogue: collapse lanes once, then the PPO loss for this token tile ----
    @pl.when(v == pl.num_programs(1) - 1)
    def _():
        m_lane = m_sc[...]                                        # (tn, 128)
        m_row = jnp.max(m_lane, axis=-1, keepdims=True)           # (tn, 1)
        s_row = jnp.sum(s_sc[...] * jnp.exp(m_lane - m_row),
                        axis=-1, keepdims=True)                   # (tn, 1)
        log_probs = (jnp.sum(pick_sc[...], axis=-1, keepdims=True)
                     - (m_row + jnp.log(s_row)))                  # (tn, 1)

        olp = olp_ref[...]
        adv = adv_ref[...]
        ratio = jnp.exp(log_probs - olp + 1e-8)
        surr1 = ratio * adv
        surr2 = jnp.clip(ratio, 1.0 - clip_eps, 1.0 + clip_eps) * adv
        loss = -jnp.minimum(surr1, surr2)
        if mask_ref is not None:
            loss = loss * mask_ref[...]
        loss_ref[...] = loss


def _fused_ppo_masked_kernel(x_ref, w_ref, b_ref, lbl_ref, olp_ref, adv_ref,
                             mask_ref, loss_ref, m_sc, s_sc, pick_sc, **kw):
    _fused_ppo_body(x_ref, w_ref, b_ref, lbl_ref, olp_ref, adv_ref, mask_ref,
                    loss_ref, m_sc, s_sc, pick_sc, **kw)


def _fused_ppo_nomask_kernel(x_ref, w_ref, b_ref, lbl_ref, olp_ref, adv_ref,
                             loss_ref, m_sc, s_sc, pick_sc, **kw):
    _fused_ppo_body(x_ref, w_ref, b_ref, lbl_ref, olp_ref, adv_ref, None,
                    loss_ref, m_sc, s_sc, pick_sc, **kw)


# --------------------------------------------------------------------------- #
# Full PPOModel forward
# --------------------------------------------------------------------------- #
def ppo_model_forward(input_tensor, lin_weight, lin_bias, labels,
                      old_log_probs, advantages, action_mask=None, *,
                      clip_eps: float = 0.2, token_tile: int = 512,
                      vocab_tile: int = 512, matmul_precision=None):
    """PPOModel.forward: linear -> log_probs_from_logits -> PolicyLoss (scalar f32)."""
    B, T, H = input_tensor.shape
    V = lin_weight.shape[0]
    N = B * T
    has_mask = action_mask is not None

    x_item = jnp.dtype(input_tensor.dtype).itemsize
    w_item = jnp.dtype(lin_weight.dtype).itemsize
    budget = _vmem_budget_bytes()

    # ---- tile selection (VMEM-budgeted; prefer shrinking tv before tn) ----
    tn = _round_up(min(token_tile, N), 16)
    tv = min(max(128, (vocab_tile // 128) * 128), _round_up(V, 128))
    tn, tv = _fit_tiles(tn, tv, H, x_item, w_item, budget)
    # v7x: make sure the "parallel" token axis has >= 2 steps when possible so
    # both TensorCores get work (no effect on v5e/v6e single-TC chips).
    if _round_up(N, tn) // tn < 2:
        half = _round_up(_cdiv(N, 2), 16)
        if half < tn:
            tn = half
    n_pad = _round_up(N, tn)
    n_tok = n_pad // tn
    n_voc = _cdiv(V, tv)
    needs_vmask = (V % tv) != 0

    # ---- flatten / pad host-side operands (all tiny except x itself) ----
    x2 = input_tensor.reshape(N, H)
    lbl = labels.reshape(N, 1).astype(jnp.int32)
    olp = old_log_probs.reshape(N, 1).astype(jnp.float32)
    adv = advantages.reshape(N, 1).astype(jnp.float32)
    ops = [x2, lbl, olp, adv]
    if has_mask:
        ops.append(action_mask.reshape(N, 1).astype(jnp.float32))
    if n_pad != N:
        ops = [jnp.pad(a, ((0, n_pad - N), (0, 0))) for a in ops]
    x2, lbl, olp, adv = ops[:4]
    mask2 = ops[4] if has_mask else None
    b2 = lin_bias.reshape(1, V).astype(jnp.float32)

    # TODO(synk): tile the hidden (H) contraction dimension for very large hidden sizes.
    row_spec = pl.BlockSpec((tn, 1), lambda i, v: (i, 0))
    in_specs = [
        pl.BlockSpec((tn, H), lambda i, v: (i, 0)),    # x
        pl.BlockSpec((tv, H), lambda i, v: (v, 0)),    # W, natural (V, H) layout
        pl.BlockSpec((1, tv), lambda i, v: (0, v)),    # bias
        row_spec,                                      # labels
        row_spec,                                      # old log-probs
        row_spec,                                      # advantages
    ]
    args = [x2, lin_weight, b2, lbl, olp, adv]
    if has_mask:
        in_specs.append(row_spec)
        args.append(mask2)
        kernel = _fused_ppo_masked_kernel
    else:
        kernel = _fused_ppo_nomask_kernel

    cost = pl.CostEstimate(
        flops=2 * n_pad * H * (n_voc * tv) + 12 * n_pad,
        transcendentals=n_pad * (n_voc * tv) + 2 * n_pad,
        bytes_accessed=(n_tok * n_voc * tv * H * w_item   # weight re-stream
                        + n_pad * H * x_item
                        + (5 if has_mask else 4) * n_pad * 4
                        + V * 4))

    per_token = pl.pallas_call(
        functools.partial(kernel, tv=tv, v_total=V, clip_eps=clip_eps,
                          needs_vmask=needs_vmask, precision=matmul_precision),
        out_shape=jax.ShapeDtypeStruct((n_pad, 1), jnp.float32),
        grid_spec=pltpu.PrefetchScalarGridSpec(
            num_scalar_prefetch=0,
            grid=(n_tok, n_voc),
            in_specs=in_specs,
            out_specs=row_spec,
            scratch_shapes=[pltpu.VMEM((tn, 128), jnp.float32)] * 3,
        ),
        compiler_params=pltpu.CompilerParams(
            dimension_semantics=("parallel", "arbitrary"),
            vmem_limit_bytes=budget),
        cost_estimate=cost,
    )(*args)

    # tiny (B, T) reduction in plain JAX (negligible next to the matmul)
    per_token = per_token[:N, 0].reshape(B, T)   # already masked if has_mask
    if has_mask:
        den = action_mask.astype(jnp.float32).sum(axis=-1)
        per_row = per_token.sum(axis=-1) / den
    else:
        per_row = per_token.mean(axis=-1)
    return per_row.mean()


# --------------------------------------------------------------------------- #
# Pure-JAX reference (mirrors the PyTorch module)
# --------------------------------------------------------------------------- #
def _reference_forward(x, w, b, labels, old_log_probs, advantages, action_mask,
                       clip_eps=0.2):
    logits = jnp.einsum("bth,vh->btv", x, w) + b
    lse = jax.scipy.special.logsumexp(logits, axis=-1)
    picked = jnp.take_along_axis(logits, labels[..., None], axis=-1)[..., 0]
    log_probs = picked - lse
    ratio = jnp.exp(log_probs - old_log_probs + 1e-8)
    surr1 = ratio * advantages
    surr2 = jnp.clip(ratio, 1 - clip_eps, 1 + clip_eps) * advantages
    loss = -jnp.minimum(surr1, surr2)
    if action_mask is None:
        per_row = loss.mean(axis=-1)
    else:
        per_row = (loss * action_mask).sum(axis=-1) / action_mask.sum(axis=-1)
    return per_row.mean()


# --------------------------------------------------------------------------- #
# main
# --------------------------------------------------------------------------- #
if __name__ == "__main__":
    key = jax.random.PRNGKey(0)
    B, T, H, V = 2, 8, 32, 128
    ks = jax.random.split(key, 7)

    # Production-realistic dtypes: bf16 activations / head weights, f32 stats.
    x = jax.random.normal(ks[0], (B, T, H), jnp.float32).astype(jnp.bfloat16)
    W = (0.05 * jax.random.normal(ks[1], (V, H), jnp.float32)).astype(jnp.bfloat16)
    bias = 0.05 * jax.random.normal(ks[2], (V,), jnp.float32)
    labels = jax.random.randint(ks[3], (B, T), 0, V, dtype=jnp.int32)

    xf, Wf = x.astype(jnp.float32), W.astype(jnp.float32)
    logits_ref = jnp.einsum("bth,vh->btv", xf, Wf) + bias
    lp_ref = (jnp.take_along_axis(logits_ref, labels[..., None], -1)[..., 0]
              - jax.scipy.special.logsumexp(logits_ref, axis=-1))
    # old log-probs near the current policy (realistic PPO regime, bounded ratios)
    old_log_probs = lp_ref + 0.1 * jax.random.normal(ks[4], (B, T), jnp.float32)
    advantages = jax.random.normal(ks[5], (B, T), jnp.float32)
    action_mask = (jax.random.uniform(ks[6], (B, T)) > 0.3).astype(jnp.float32)
    action_mask = action_mask.at[:, 0].set(1.0)   # no fully-masked rows

    out = jax.block_until_ready(
        ppo_model_forward(x, W, bias, labels, old_log_probs, advantages,
                          action_mask, clip_eps=0.2))
    ref = _reference_forward(xf, Wf, bias, labels, old_log_probs, advantages,
                             action_mask, clip_eps=0.2)
    assert jnp.allclose(out, ref, atol=1e-4, rtol=1e-4), (out, ref)

    # action_mask=None path (denominator = T)
    out2 = jax.block_until_ready(
        ppo_model_forward(x, W, bias, labels, old_log_probs, advantages,
                          None, clip_eps=0.2))
    ref2 = _reference_forward(xf, Wf, bias, labels, old_log_probs, advantages,
                              None, clip_eps=0.2)
    assert jnp.allclose(out2, ref2, atol=1e-4, rtol=1e-4), (out2, ref2)

    print("KERNEL_OK")
</pallas_src>

<mosaic_0001>
module attributes {stable_mosaic.version = 11 : i64} {
  func.func @_fused_ppo_masked_kernel(%arg0: i32, %arg1: i32, %arg2: memref<16x32xbf16, #tpu.memory_space<vmem>>, %arg3: memref<128x32xbf16, #tpu.memory_space<vmem>>, %arg4: memref<1x128xf32, #tpu.memory_space<vmem>>, %arg5: memref<16x1xi32, #tpu.memory_space<vmem>>, %arg6: memref<16x1xf32, #tpu.memory_space<vmem>>, %arg7: memref<16x1xf32, #tpu.memory_space<vmem>>, %arg8: memref<16x1xf32, #tpu.memory_space<vmem>>, %arg9: memref<16x1xf32, #tpu.memory_space<vmem>>, %arg10: memref<16x128xf32, #tpu.memory_space<vmem>>, %arg11: memref<16x128xf32, #tpu.memory_space<vmem>>, %arg12: memref<16x128xf32, #tpu.memory_space<vmem>>) attributes {dimension_semantics = [#tpu.dimension_semantics<parallel>, #tpu.dimension_semantics<arbitrary>], iteration_bounds = array<i64: 1, 1>, scalar_prefetch = 0 : i64, scratch_operands = 3 : i64, tpu.core_type = #tpu.core_type<tc>, window_params = [{transform_indices = @transform_0, window_bounds = array<i64: 16, 32>}, {transform_indices = @transform_1, window_bounds = array<i64: 128, 32>}, {transform_indices = @transform_2, window_bounds = array<i64: 1, 128>}, {transform_indices = @transform_3, window_bounds = array<i64: 16, 1>}, {transform_indices = @transform_4, window_bounds = array<i64: 16, 1>}, {transform_indices = @transform_5, window_bounds = array<i64: 16, 1>}, {transform_indices = @transform_6, window_bounds = array<i64: 16, 1>}, {transform_indices = @transform_7, window_bounds = array<i64: 16, 1>}]} {
    %c0_i32 = arith.constant 0 : i32
    %0 = arith.cmpi eq, %arg1, %c0_i32 : i32
    %1 = arith.extui %0 : i1 to i32
    %c0_i32_0 = arith.constant 0 : i32
    %2 = arith.cmpi ne, %1, %c0_i32_0 : i32
    scf.if %2 {
      %cst_25 = arith.constant 0xFF800000 : f32
      %38 = vector.broadcast %cst_25 : f32 to vector<16x128xf32>
      %c0_26 = arith.constant 0 : index
      %c0_27 = arith.constant 0 : index
      %39 = vector.load %arg10[%c0_26, %c0_27] : memref<16x128xf32, #tpu.memory_space<vmem>>, vector<16x128xf32>
      tpu.vector_store %arg10[%c0_26, %c0_27], %38 {strides = array<i32>} : memref<16x128xf32, #tpu.memory_space<vmem>>, vector<16x128xf32>,
      %cst_28 = arith.constant 0.000000e+00 : f32
      %40 = vector.broadcast %cst_28 : f32 to vector<16x128xf32>
      %c0_29 = arith.constant 0 : index
      %c0_30 = arith.constant 0 : index
      %41 = vector.load %arg11[%c0_29, %c0_30] : memref<16x128xf32, #tpu.memory_space<vmem>>, vector<16x128xf32>
      tpu.vector_store %arg11[%c0_29, %c0_30], %40 {strides = array<i32>} : memref<16x128xf32, #tpu.memory_space<vmem>>, vector<16x128xf32>,
      %cst_31 = arith.constant 0.000000e+00 : f32
      %42 = vector.broadcast %cst_31 : f32 to vector<16x128xf32>
      %c0_32 = arith.constant 0 : index
      %c0_33 = arith.constant 0 : index
      %43 = vector.load %arg12[%c0_32, %c0_33] : memref<16x128xf32, #tpu.memory_space<vmem>>, vector<16x128xf32>
      tpu.vector_store %arg12[%c0_32, %c0_33], %42 {strides = array<i32>} : memref<16x128xf32, #tpu.memory_space<vmem>>, vector<16x128xf32>,
    } else {
    }
    %c0 = arith.constant 0 : index
    %c0_1 = arith.constant 0 : index
    %3 = vector.load %arg2[%c0, %c0_1] : memref<16x32xbf16, #tpu.memory_space<vmem>>, vector<16x32xbf16>
    %c0_2 = arith.constant 0 : index
    %c0_3 = arith.constant 0 : index
    %4 = vector.load %arg3[%c0_2, %c0_3] : memref<128x32xbf16, #tpu.memory_space<vmem>>, vector<128x32xbf16>
    %cst = arith.constant dense<0.000000e+00> : vector<16x128xf32>
    %5 = tpu.matmul %3, %4, %cst {dimension_numbers = #tpu.dot_dimension_numbers<[1], [1], [0], [0], [0, 0, 1, 0], [], []>} : vector<16x32xbf16>, vector<128x32xbf16>, vector<16x128xf32> -> vector<16x128xf32>
    %c0_4 = arith.constant 0 : index
    %c0_5 = arith.constant 0 : index
    %6 = vector.load %arg4[%c0_4, %c0_5] : memref<1x128xf32, #tpu.memory_space<vmem>>, vector<1x128xf32>
    %7 = vector.broadcast %6 : vector<1x128xf32> to vector<16x128xf32>
    %8 = arith.addf %5, %7 : vector<16x128xf32>
    %c0_6 = arith.constant 0 : index
    %c0_7 = arith.constant 0 : index
    %9 = vector.load %arg5[%c0_6, %c0_7] : memref<16x1xi32, #tpu.memory_space<vmem>>, vector<16x1xi32>
    %10 = tpu.iota {dimensions = array<i32: 1>} : vector<16x128xi32>
    %c128_i32 = arith.constant 128 : i32
    %11 = arith.muli %arg1, %c128_i32 : i32
    %c0_8 = arith.constant 0 : index
    %c0_9 = arith.constant 0 : index
    %12 = vector.load %arg10[%c0_8, %c0_9] : memref<16x128xf32, #tpu.memory_space<vmem>>, vector<16x128xf32>
    %c0_i32_10 = arith.constant 0 : i32
    %13 = arith.addi %11, %c0_i32_10 : i32
    %14 = vector.broadcast %13 : i32 to vector<16x128xi32>
    %15 = arith.addi %10, %14 : vector<16x128xi32>
    %16 = arith.maximumf %12, %8 : vector<16x128xf32>
    %cst_11 = arith.constant 0.000000e+00 : f32
    %17 = vector.broadcast %cst_11 : f32 to vector<16x128xf32>
    %c0_12 = arith.constant 0 : index
    %c0_13 = arith.constant 0 : index
    %18 = vector.load %arg12[%c0_12, %c0_13] : memref<16x128xf32, #tpu.memory_space<vmem>>, vector<16x128xf32>
    %19 = arith.subf %8, %16 : vector<16x128xf32>
    %20 = math.exp %19 : vector<16x128xf32>
    %21 = arith.addf %17, %20 : vector<16x128xf32>
    %22 = vector.broadcast %9 : vector<16x1xi32> to vector<16x128xi32>
    %23 = arith.cmpi eq, %15, %22 : vector<16x128xi32>
    %cst_14 = arith.constant 0.000000e+00 : f32
    %24 = vector.broadcast %cst_14 : f32 to vector<16x128xf32>
    %25 = arith.select %23, %8, %24 : vector<16x128xi1>, vector<16x128xf32>
    %26 = arith.addf %18, %25 : vector<16x128xf32>
    %c0_15 = arith.constant 0 : index
    %c0_16 = arith.constant 0 : index
    %27 = vector.load %arg11[%c0_15, %c0_16] : memref<16x128xf32, #tpu.memory_space<vmem>>, vector<16x128xf32>
    %28 = arith.subf %12, %16 : vector<16x128xf32>
    %29 = math.exp %28 : vector<16x128xf32>
    %30 = arith.mulf %27, %29 : vector<16x128xf32>
    %31 = arith.addf %30, %21 : vector<16x128xf32>
    %c0_17 = arith.constant 0 : index
    %c0_18 = arith.constant 0 : index
    %32 = vector.load %arg11[%c0_17, %c0_18] : memref<16x128xf32, #tpu.memory_space<vmem>>, vector<16x128xf32>
    tpu.vector_store %arg11[%c0_17, %c0_18], %31 {strides = array<i32>} : memref<16x128xf32, #tpu.memory_space<vmem>>, vector<16x128xf32>,
    %c0_19 = arith.constant 0 : index
    %c0_20 = arith.constant 0 : index
    %33 = vector.load %arg10[%c0_19, %c0_20] : memref<16x128xf32, #tpu.memory_space<vmem>>, vector<16x128xf32>
    tpu.vector_store %arg10[%c0_19, %c0_20], %16 {strides = array<i32>} : memref<16x128xf32, #tpu.memory_space<vmem>>, vector<16x128xf32>,
    %c0_21 = arith.constant 0 : index
    %c0_22 = arith.constant 0 : index
    %34 = vector.load %arg12[%c0_21, %c0_22] : memref<16x128xf32, #tpu.memory_space<vmem>>, vector<16x128xf32>
    tpu.vector_store %arg12[%c0_21, %c0_22], %26 {strides = array<i32>} : memref<16x128xf32, #tpu.memory_space<vmem>>, vector<16x128xf32>,
    %c0_i32_23 = arith.constant 0 : i32
    %35 = arith.cmpi eq, %arg1, %c0_i32_23 : i32
    %36 = arith.extui %35 : i1 to i32
    %c0_i32_24 = arith.constant 0 : i32
    %37 = arith.cmpi ne, %36, %c0_i32_24 : i32
    scf.if %37 {
      %c0_25 = arith.constant 0 : index
      %c0_26 = arith.constant 0 : index
      %38 = vector.load %arg10[%c0_25, %c0_26] : memref<16x128xf32, #tpu.memory_space<vmem>>, vector<16x128xf32>
      %cst_27 = arith.constant dense<0xFF800000> : vector<16xf32>
      %39 = vector.multi_reduction <maximumf>, %38, %cst_27 [1] : vector<16x128xf32> to vector<16xf32>
      %40 = vector.shape_cast %39 : vector<16xf32> to vector<16x1xf32>
      %c0_28 = arith.constant 0 : index
      %c0_29 = arith.constant 0 : index
      %41 = vector.load %arg11[%c0_28, %c0_29] : memref<16x128xf32, #tpu.memory_space<vmem>>, vector<16x128xf32>
      %42 = vector.broadcast %40 : vector<16x1xf32> to vector<16x128xf32>
      %43 = arith.subf %38, %42 : vector<16x128xf32>
      %44 = math.exp %43 : vector<16x128xf32>
      %45 = arith.mulf %41, %44 : vector<16x128xf32>
      %cst_30 = arith.constant dense<0.000000e+00> : vector<16xf32>
      %46 = vector.multi_reduction <add>, %45, %cst_30 [1] : vector<16x128xf32> to vector<16xf32>
      %47 = vector.shape_cast %46 : vector<16xf32> to vector<16x1xf32>
      %c0_31 = arith.constant 0 : index
      %c0_32 = arith.constant 0 : index
      %48 = vector.load %arg12[%c0_31, %c0_32] : memref<16x128xf32, #tpu.memory_space<vmem>>, vector<16x128xf32>
      %cst_33 = arith.constant dense<0.000000e+00> : vector<16xf32>
      %49 = vector.multi_reduction <add>, %48, %cst_33 [1] : vector<16x128xf32> to vector<16xf32>
      %50 = vector.shape_cast %49 : vector<16xf32> to vector<16x1xf32>
      %51 = math.log %47 : vector<16x1xf32>
      %52 = arith.addf %40, %51 : vector<16x1xf32>
      %53 = arith.subf %50, %52 : vector<16x1xf32>
      %c0_34 = arith.constant 0 : index
      %c0_35 = arith.constant 0 : index
      %54 = vector.load %arg6[%c0_34, %c0_35] : memref<16x1xf32, #tpu.memory_space<vmem>>, vector<16x1xf32>
      %c0_36 = arith.constant 0 : index
      %c0_37 = arith.constant 0 : index
      %55 = vector.load %arg7[%c0_36, %c0_37] : memref<16x1xf32, #tpu.memory_space<vmem>>, vector<16x1xf32>
      %56 = arith.subf %53, %54 : vector<16x1xf32>
      %cst_38 = arith.constant 9.99999993E-9 : f32
      %57 = vector.broadcast %cst_38 : f32 to vector<16x1xf32>
      %58 = arith.addf %56, %57 : vector<16x1xf32>
      %59 = math.exp %58 : vector<16x1xf32>
      %60 = arith.mulf %59, %55 : vector<16x1xf32>
      %cst_39 = arith.constant 8.000000e-01 : f32
      %cst_40 = arith.constant 1.200000e+00 : f32
      %61 = vector.broadcast %cst_39 : f32 to vector<16x1xf32>
      %62 = arith.maximumf %61, %59 : vector<16x1xf32>
      %63 = vector.broadcast %cst_40 : f32 to vector<16x1xf32>
      %64 = arith.minimumf %63, %62 : vector<16x1xf32>
      %65 = arith.mulf %64, %55 : vector<16x1xf32>
      %66 = arith.minimumf %60, %65 : vector<16x1xf32>
      %cst_41 = arith.constant 0.000000e+00 : f32
      %67 = vector.broadcast %cst_41 : f32 to vector<16x1xf32>
      %68 = arith.subf %67, %66 : vector<16x1xf32>
      %c0_42 = arith.constant 0 : index
      %c0_43 = arith.constant 0 : index
      %69 = vector.load %arg8[%c0_42, %c0_43] : memref<16x1xf32, #tpu.memory_space<vmem>>, vector<16x1xf32>
      %70 = arith.mulf %68, %69 : vector<16x1xf32>
      %c0_44 = arith.constant 0 : index
      %c0_45 = arith.constant 0 : index
      %71 = vector.load %arg9[%c0_44, %c0_45] : memref<16x1xf32, #tpu.memory_space<vmem>>, vector<16x1xf32>
      tpu.vector_store %arg9[%c0_44, %c0_45], %70 {strides = array<i32>} : memref<16x1xf32, #tpu.memory_space<vmem>>, vector<16x1xf32>,
    } else {
    }
    return
  }
  func.func @transform_0(%arg0: i32, %arg1: i32) -> (i32, i32) {
    %c0_i32 = arith.constant 0 : i32
    %c0_i32_0 = arith.constant 0 : i32
    return %arg0, %c0_i32 : i32, i32
  }
  func.func @transform_1(%arg0: i32, %arg1: i32) -> (i32, i32) {
    %c0_i32 = arith.constant 0 : i32
    %c0_i32_0 = arith.constant 0 : i32
    return %arg1, %c0_i32 : i32, i32
  }
  func.func @transform_2(%arg0: i32, %arg1: i32) -> (i32, i32) {
    %c0_i32 = arith.constant 0 : i32
    %c0_i32_0 = arith.constant 0 : i32
    return %c0_i32, %arg1 : i32, i32
  }
  func.func @transform_3(%arg0: i32, %arg1: i32) -> (i32, i32) {
    %c0_i32 = arith.constant 0 : i32
    %c0_i32_0 = arith.constant 0 : i32
    return %arg0, %c0_i32 : i32, i32
  }
  func.func @transform_4(%arg0: i32, %arg1: i32) -> (i32, i32) {
    %c0_i32 = arith.constant 0 : i32
    %c0_i32_0 = arith.constant 0 : i32
    return %arg0, %c0_i32 : i32, i32
  }
  func.func @transform_5(%arg0: i32, %arg1: i32) -> (i32, i32) {
    %c0_i32 = arith.constant 0 : i32
    %c0_i32_0 = arith.constant 0 : i32
    return %arg0, %c0_i32 : i32, i32
  }
  func.func @transform_6(%arg0: i32, %arg1: i32) -> (i32, i32) {
    %c0_i32 = arith.constant 0 : i32
    %c0_i32_0 = arith.constant 0 : i32
    return %arg0, %c0_i32 : i32, i32
  }
  func.func @transform_7(%arg0: i32, %arg1: i32) -> (i32, i32) {
    %c0_i32 = arith.constant 0 : i32
    %c0_i32_0 = arith.constant 0 : i32
    return %arg0, %c0_i32 : i32, i32
  }
}

</mosaic_0001>

<bundles_post_ra>
// kernel: tpu_custom_call.1
= control target key start
LH: loop header
LB: loop body
LE: loop exit
PB: predicated region body
PF: predicated region fallthrough
CT: control target
= control target key end

     0   :  { %vm103_vm0 = vcmask 261120   ;;  %v338_v11 = vmov 0   ;;  %v147_v24 = vlaneseq  ;;  %vm261_vm3 = vcmask 7168   ;;  %s448_s1 = inlined_call_operand.vmem [shape: bf16[128,32], index: 1, kind: input, shape index: {}]   ;;  %s449_s2 = inlined_call_operand.vmem [shape: f32[1,128], index: 2, kind: input, shape index: {}]   ;;  %s450_s3 = inlined_call_operand.vmem [shape: s32[16,1], index: 3, kind: input, shape index: {}]   ;;  %s451_s0 = inlined_call_operand.vmem [shape: bf16[16,32], index: 0, kind: input, shape index: {}]   ;;  %s452_s4 = inlined_call_operand.vmem [shape: f32[16,1], index: 4, kind: input, shape index: {}]   ;;  %s453_s5 = inlined_call_operand.vmem [shape: f32[16,1], index: 5, kind: input, shape index: {}]   ;;  %s454_s6 = inlined_call_operand.vmem [shape: f32[16,1], index: 6, kind: input, shape index: {}]   ;;  %s455_s7 = inlined_call_operand.vmem [shape: f32[16,1], index: 7, kind: output, shape index: {}]  }
   0x1   :  { %v313_v0 = vld [vmem:[%s448_s1 + $0x38] sm:$0xff]  ;;  %v312_v2 = vld [vmem:[%s448_s1 + $0x30] sm:$0xff]  ;;  %v311_v4 = vld [vmem:[%s448_s1 + $0x28] sm:$0xff]  ;;  %315 = vset.pattern.permute.xlu1 %v338_v11  ;;  %316 = vset.pattern.permute.xlu0 %v338_v11 }
   0x2   :  { %v129_v1 = vsel %vm103_vm0, %v313_v0, 0  ;;  %v126_v3 = vsel %vm103_vm0, %v312_v2, 0  ;;  %v123_v5 = vsel %vm103_vm0, %v311_v4, 0  ;;  %v310_v6 = vld [vmem:[%s448_s1 + $0x20] sm:$0xff]  ;;  %v309_v8 = vld [vmem:[%s448_s1 + $0x18] sm:$0xff]  ;;  %v308_v12 = vld [vmem:[%s448_s1 + $0x10] sm:$0xff] }
   0x3   :  { %131 = vmatpush.bf16.xpose.msra.mxu0 %v129_v1  ;;  %v120_v7 = vsel %vm103_vm0, %v310_v6, 0  ;;  %v117_v9 = vsel %vm103_vm0, %v309_v8, 0  ;;  %v145_v10 = vld [vmem:[%s450_s3] sm:$0xff]  ;;  %v114_v13 = vsel %vm103_vm0, %v308_v12, 0  ;;  %v146_v14 = vld [vmem:[%s450_s3 + $0x8] sm:$0xff]  ;;  %v148_v26 = vand.u32 127, %v147_v24 }
   0x4   :  { %167 = vperm.xlu1 %315, %v145_v10   ;;  %v307_v15 = vld [vmem:[%s448_s1 + $0x8] sm:$0xff]  ;;  %v306_v17 = vld [vmem:[%s448_s1] sm:$0xff] }
   0x5   :  { %v111_v16 = vsel %vm103_vm0, %v307_v15, 0  ;;  %v108_v18 = vsel %vm103_vm0, %v306_v17, 0  ;;  %v305_v19 = vld [vmem:[%s451_s0] sm:$0xff]  ;;  %v234_v8 = vld [vmem:[%s452_s4 + $0x8] sm:$0xff] }
   0x6   :  { %v317_v21 = vld [vmem:[%s449_s2] ss:$0 sm:$0xff]  ;;  %v236_v24 = vld [vmem:[%s453_s5 + $0x8] sm:$0xff] }
   0x7   :  { %v233_v63 = vld [vmem:[%s452_s4] sm:$0xff] }
   0x8   :  { %v235_v15 = vld [vmem:[%s453_s5] sm:$0xff] }
   0xb   :  { %132 = vmatpush.bf16.xpose.msra.mxu0 %v126_v3 }
   0xc   :  { %170 = vperm.xlu1 %315, %v146_v14  }
  0x13   :  { %133 = vmatpush.bf16.xpose.msra.mxu0 %v123_v5 }
  0x1b   :  { %134 = vmatpush.bf16.xpose.msra.mxu0 %v120_v7 }
  0x23   :  { %135 = vmatpush.bf16.xpose.msra.mxu0 %v117_v9 }
  0x2b   :  { %136 = vmatpush.bf16.xpose.msra.mxu0 %v114_v13 }
  0x33   :  { %137 = vmatpush.bf16.xpose.msra.mxu0 %v111_v16 }
  0x3b   :  { %138 = vmatpush.bf16.xpose.msra.mxu0 %v108_v18 }
  0x42   :  { %304 = vmatmul.msk.bf16.vlgmr.msra.gmra.mxu0 %vm103_vm0, %v305_v19 }
  0x76   :  { %v168_v20 = vpop.permute.xlu1 %167 }
  0x77   :  { %vm172_vm2 = vcmp.eq.s32.totalorder %v148_v26, %v168_v20 }
  0x7e   :  { %v171_v25 = vpop.permute.xlu1 %170 }
  0x7f   :  { %vm173_vm1 = vcmp.eq.s32.totalorder %v148_v26, %v171_v25 }
  0xbf   :  { %v140_v22 = vpop.f32.mrf.mxu0 }
  0xc0   :  { %v141_v23 = vadd.f32 %v317_v21, %v140_v22 }
  0xc2   :  { %201 = vmax.xlane.f32.xlu0 %v141_v23  ;;  %v174_v30 = vsel %vm172_vm2, %v141_v23, 0.0  ;;  %v180_v31 = vsub.f32 -inf, %v141_v23  ;;  %v158_v33 = vsub.f32 %v141_v23, %v141_v23 }
  0xc4   :  { %v182_v32 = vmul.f32 1.442695, %v180_v31  ;;  %v160_v35 = vmul.f32 1.442695, %v158_v33 }
  0xc6   :  { %318 = vpow2.f32 %v182_v32 }
  0xc7   :  { %v142_v27 = vpop.f32.mrf.mxu0  ;;  %320 = vpow2.f32 %v160_v35 }
  0xc8   :  { %v143_v28 = vadd.f32 %v317_v21, %v142_v27  ;;  %v257_v21 = vld [vmem:[%s454_s6] sm:$0xff] }
  0xca   :  { %203 = vmax.xlane.f32.xlu0 %v143_v28  ;;  %v175_v29 = vsel %vm173_vm1, %v143_v28, 0.0  ;;  %v181_v34 = vsub.f32 -inf, %v143_v28  ;;  %v159_v41 = vsub.f32 %v143_v28, %v143_v28 }
  0xcb   :  { %223 = vadd.xlane.f32.xlu1 %v175_v29 }
  0xcc   :  { %v184_v37 = vmul.f32 1.442695, %v181_v34  ;;  %v319_v39 = vpop.eup %318  ;;  %v162_v43 = vmul.f32 1.442695, %v159_v41 }
  0xcd   :  { %v186_v42 = vmul.f32 0.0, %v319_v39  ;;  %v321_v45 = vpop.eup %320 }
  0xce   :  { %322 = vpow2.f32 %v184_v37 }
  0xcf   :  { %v188_v48 = vadd.f32 %v321_v45, %v186_v42 }
  0xd2   :  { %221 = vadd.xlane.f32.xlu0 %v174_v30  ;;  %v258_v30 = vld [vmem:[%s454_s6 + $0x8] sm:$0xff] }
  0xd4   :  { %v323_v47 = vpop.eup %322 }
  0xd5   :  { %v187_v52 = vmul.f32 0.0, %v323_v47 }
 0x135   :  { %v202_v36 = vpop.xlane.xlu0 %201 }
 0x136   :  { %v207_v38 = vsub.f32 %v141_v23, %v202_v36 }
 0x138   :  { %v209_v40 = vmul.f32 1.442695, %v207_v38 }
 0x13a   :  { %324 = vpow2.f32 %v209_v40 }
 0x13b   :  { %326 = vpow2.f32 %v162_v43 }
 0x13d   :  { %v204_v44 = vpop.xlane.xlu0 %203 }
 0x13e   :  { %v208_v46 = vsub.f32 %v143_v28, %v204_v44  ;;  %v224_v7 = vpop.xlane.xlu1 %223 }
 0x140   :  { %v325_v49 = vpop.eup %324  ;;  %v211_v50 = vmul.f32 1.442695, %v208_v46 }
 0x141   :  { %v213_v51 = vmul.f32 %v325_v49, %v188_v48  ;;  %v327_v53 = vpop.eup %326 }
 0x142   :  { %328 = vpow2.f32 %v211_v50  ;;  %v189_v54 = vadd.f32 %v327_v53, %v187_v52 }
 0x143   :  { %215 = vadd.xlane.f32.xlu2 %v213_v51 }
 0x145   :  { %v222_v62 = vpop.xlane.xlu0 %221 }
 0x148   :  { %v329_v55 = vpop.eup %328 }
 0x149   :  { %v214_v56 = vmul.f32 %v329_v55, %v189_v54 }
 0x14b   :  { %217 = vadd.xlane.f32.xlu2 %v214_v56 }
 0x1b6   :  { %v216_v57 = vpop.xlane.xlu2 %215 }
 0x1b7   :  { %330 = vlog2.f32 %v216_v57 }
 0x1bd   :  { %v331_v58 = vpop.eup %330 }
 0x1be   :  { %v226_v59 = vmul.f32 0.6931472, %v331_v58  ;;  %v218_v60 = vpop.xlane.xlu2 %217 }
 0x1bf   :  { %332 = vlog2.f32 %v218_v60 }
 0x1c0   :  { %v229_v61 = vadd.f32 %v226_v59, %v202_v36 }
 0x1c2   :  { %v231_v0 = vsub.f32 %v222_v62, %v229_v61 }
 0x1c4   :  { %v237_v1 = vsub.f32 %v231_v0, %v233_v63 }
 0x1c5   :  { %v333_v2 = vpop.eup %332 }
 0x1c6   :  { %v239_v3 = vadd.f32 1e-08, %v237_v1  ;;  %v228_v4 = vmul.f32 0.6931472, %v333_v2 }
 0x1c8   :  { %v241_v5 = vmul.f32 1.442695, %v239_v3  ;;  %v230_v6 = vadd.f32 %v228_v4, %v204_v44 }
 0x1ca   :  { %334 = vpow2.f32 %v241_v5  ;;  %v232_v9 = vsub.f32 %v224_v7, %v230_v6 }
 0x1cc   :  { %v238_v10 = vsub.f32 %v232_v9, %v234_v8 }
 0x1ce   :  { %v240_v11 = vadd.f32 1e-08, %v238_v10 }
 0x1d0   :  { %v335_v12 = vpop.eup %334  ;;  %v243_v13 = vmul.f32 1.442695, %v240_v11 }
 0x1d1   :  { %v247_v14 = vmax.f32 %v335_v12, 0.8  ;;  %v245_v17 = vmul.f32 %v335_v12, %v235_v15 }
 0x1d2   :  { %336 = vpow2.f32 %v243_v13 }
 0x1d3   :  { %v249_v16 = vmin.f32 %v247_v14, 1.2 }
 0x1d5   :  { %v251_v18 = vmul.f32 %v249_v16, %v235_v15 }
 0x1d7   :  { %v253_v19 = vmin.f32 %v245_v17, %v251_v18 }
 0x1d8   :  { %v337_v20 = vpop.eup %336 }
 0x1d9   :  { %v255_v22 = vsub.f32 0.0, %v253_v19  ;;  %v248_v23 = vmax.f32 %v337_v20, 0.8  ;;  %v246_v27 = vmul.f32 %v337_v20, %v236_v24 }
 0x1db   :  { %v259_v25 = vmul.f32 %v257_v21, %v255_v22  ;;  %v250_v26 = vmin.f32 %v248_v23, 1.2 }
 0x1dd   :  { %262 = vst.msk [vmem:[%s455_s7] sm:$0xff] %vm261_vm3, %v259_v25  ;;  %v252_v28 = vmul.f32 %v250_v26, %v236_v24 }
 0x1df   :  { %v254_v29 = vmin.f32 %v246_v27, %v252_v28 }
 0x1e1   :  { %v256_v31 = vsub.f32 0.0, %v254_v29 }
 0x1e3   :  { %v260_v32 = vmul.f32 %v258_v30, %v256_v31 }
 0x1e5   :  { %263 = vst.msk [vmem:[%s455_s7 + $0x8] sm:$0xff] %vm261_vm3, %v260_v32 }

</bundles_post_ra>
